<compile_context>
chip_gen: v7x
topology: tpu7x:2x2x1
jax: 0.10.0
libtpu: 0.0.40
codegen_flags: <defaults>
</compile_context>

<pallas_src>
import functools

import jax
import jax.numpy as jnp
from jax import lax
from jax.experimental import pallas as pl
from jax.experimental.pallas import tpu as pltpu

_LANES = 128


def _combined_loss_kernel(*refs, has_class_weights, use_ce, use_dice,
                          use_focal, focal_alpha, focal_gamma):
    if has_class_weights:
        (pred_ref, tgt_ref, wts_ref, inter_ref, psum_ref, tsum_ref,
         ce_num_ref, ce_den_ref, foc_ref) = refs
    else:
        (pred_ref, tgt_ref, inter_ref, psum_ref, tsum_ref,
         ce_num_ref, ce_den_ref, foc_ref) = refs
        wts_ref = None

    s = pl.program_id(2)

    @pl.when(s == 0)
    def _init():
        inter_ref[...] = jnp.zeros_like(inter_ref)
        psum_ref[...] = jnp.zeros_like(psum_ref)
        tsum_ref[...] = jnp.zeros_like(tsum_ref)
        ce_num_ref[...] = jnp.zeros_like(ce_num_ref)
        ce_den_ref[...] = jnp.zeros_like(ce_den_ref)
        foc_ref[...] = jnp.zeros_like(foc_ref)

    x = pred_ref[...].astype(jnp.float32)            # (1, C, St, 128) logits
    tgt = tgt_ref[...]                                # (1, 1, St, 128) int32

    class_iota = lax.broadcasted_iota(jnp.int32, x.shape, 1)
    mask = class_iota == tgt                          # boolean one-hot

    # Shared softmax pieces: one exp, approx reciprocal on the EUP; class
    # reductions are elementwise VPU ops across the leading C axis.
    m = jnp.max(x, axis=1, keepdims=True)             # (1, 1, St, 128)
    ex = jnp.exp(x - m)
    sum_ex = jnp.sum(ex, axis=1, keepdims=True)

    if use_dice or use_focal:
        p = ex * pl.reciprocal(sum_ex, approx=True)   # softmax probs
        p_at_t = jnp.where(mask, p, 0.0)

    if use_ce or use_focal:
        lse = jnp.log(sum_ex) + m
        x_t = jnp.sum(jnp.where(mask, x, 0.0), axis=1, keepdims=True)
        ce_pix = lse - x_t                            # unweighted CE / pixel

    if use_ce:
        if has_class_weights:
            w = wts_ref[...].astype(jnp.float32)      # (1, C, 1, 128)
            w_pix = jnp.sum(jnp.where(mask, w, 0.0), axis=1, keepdims=True)
            ce_num_ref[...] += jnp.sum(w_pix * ce_pix, axis=2, keepdims=True)
            ce_den_ref[...] += jnp.sum(w_pix, axis=2, keepdims=True)
        else:
            # Denominator is the compile-time constant N*HW (handled in JAX).
            ce_num_ref[...] += jnp.sum(ce_pix, axis=2, keepdims=True)

    if use_dice:
        inter_ref[...] += jnp.sum(p_at_t, axis=2, keepdims=True)
        psum_ref[...] += jnp.sum(p, axis=2, keepdims=True)
        tsum_ref[...] += jnp.sum(jnp.where(mask, 1.0, 0.0), axis=2,
                                 keepdims=True)

    if use_focal:
        pt = jnp.sum(p_at_t, axis=1, keepdims=True)   # prob at target class
        one_m = jnp.maximum(1.0 - pt, 0.0)
        g = float(focal_gamma)
        if g == 2.0:
            mod = one_m * one_m
        elif g == 1.0:
            mod = one_m
        else:
            mod = one_m ** g
        foc_ref[...] += jnp.sum(focal_alpha * mod * ce_pix, axis=2,
                                keepdims=True)


def _vmem_budget_bytes():
    """Generation-aware VMEM budget (v7x: 64 MiB core, v5e/v6e: 128 MiB)."""
    try:
        info = pltpu.get_tpu_info()
        cap = getattr(info, "vmem_capacity_bytes", None)
        if cap:
            return int(cap) * 3 // 4          # leave compiler headroom
    except Exception:
        pass
    return 48 * 1024 * 1024                   # safe default on all generations


def _pick_s_tile(s_total, c, pred_itemsize, budget_bytes, max_tile_rows=None):
    """Rows (of 128 px) per block: big enough to approach the HBM roofline,
    small enough that the double-buffered blocks fit the VMEM budget."""
    if s_total <= 0:
        return 0, 0
    # sublane granularity for the pred dtype (8 for 4B, 16 for 2B, 32 for 1B)
    mult = max(8, 32 // max(int(pred_itemsize), 1))
    # ~3 MiB pred block target, clamped to [mult, 256] rows
    target = (3 * 1024 * 1024) // max(c * _LANES * pred_itemsize, 1)
    target = max(mult, min(int(target), 256))
    # VMEM cap: 2 in-flight buffers of (pred + target) blocks + margin
    per_row = _LANES * (c * pred_itemsize + 4)
    usable = max(budget_bytes - (8 << 20), budget_bytes // 2)
    cap_rows = max(mult, usable // (2 * per_row))
    rows = min(target, int(cap_rows))
    if max_tile_rows is not None:
        rows = min(rows, max(int(max_tile_rows), 1))
    rows = max(mult, (rows // mult) * mult)
    if s_total <= rows:
        return s_total, 1                     # single full-extent block
    # Prefer an exact divisor so the hot loop stays maskless with no leftover.
    r = rows
    lo = max(mult, rows // 2)
    while r >= lo:
        if s_total % r == 0:
            return r, s_total // r
        r -= mult
    # No nearby divisor: leftover rows fall through to the pure-JAX tail.
    return rows, s_total // rows


def _tail_partials_jax(pred_tail, tgt_tail, cw, use_ce, use_dice, use_focal,
                       focal_alpha, focal_gamma):
    """Pure-JAX partials for the few pixels the maskless kernel doesn't cover."""
    n, c, _ = pred_tail.shape
    x = pred_tail.astype(jnp.float32)
    logp = jax.nn.log_softmax(x, axis=1)
    p = jnp.exp(logp)
    onehot = jax.nn.one_hot(tgt_tail, c, axis=1, dtype=jnp.float32)  # (N, C, P)
    zeros_nc = jnp.zeros((n, c), jnp.float32)
    inter = jnp.sum(p * onehot, axis=2) if use_dice else zeros_nc
    psum = jnp.sum(p, axis=2) if use_dice else zeros_nc
    tsum = jnp.sum(onehot, axis=2) if use_dice else zeros_nc
    ce_pix = -jnp.sum(onehot * logp, axis=1)                         # (N, P)
    ce_num = jnp.float32(0.0)
    ce_den = jnp.float32(0.0)
    foc = jnp.float32(0.0)
    if use_ce:
        if cw is not None:
            w_pix = jnp.sum(onehot * cw.reshape(1, c, 1), axis=1)
            ce_num = jnp.sum(w_pix * ce_pix)
            ce_den = jnp.sum(w_pix)
        else:
            ce_num = jnp.sum(ce_pix)
    if use_focal:
        pt = jnp.sum(p * onehot, axis=1)
        foc = jnp.sum(focal_alpha * (1.0 - pt) ** focal_gamma * ce_pix)
    return inter, psum, tsum, ce_num, ce_den, foc


def combined_segmentation_loss(pred, target, *, ce_weight=1.0, dice_weight=1.0,
                               focal_weight=0.0, class_weights=None,
                               ignore_index=None, smooth=1e-8,
                               focal_alpha=1.0, focal_gamma=2.0,
                               max_tile_rows=None):
    """pred: (N, C, H, W) float logits (f32 or bf16); target: (N, H, W) ints."""
    assert ignore_index is None  # TODO(synk): ignore_index not supported.
    N, C, H, W = pred.shape
    HW = H * W
    use_ce = float(ce_weight) > 0.0
    use_dice = float(dice_weight) > 0.0
    use_focal = float(focal_weight) > 0.0
    has_cw = class_weights is not None
    cw = (jnp.asarray(class_weights, jnp.float32).reshape(C) if has_cw
          else None)

    pred_flat = pred.reshape(N, C, HW)                 # keep caller dtype
    tgt_flat = target.reshape(N, HW).astype(jnp.int32)

    s_total = HW // _LANES
    budget = _vmem_budget_bytes()
    s_tile, n_tiles = _pick_s_tile(s_total, C, pred.dtype.itemsize, budget,
                                   max_tile_rows)
    s_main = s_tile * n_tiles
    px_main = s_main * _LANES

    inter_nc = jnp.zeros((N, C), jnp.float32)
    psum_nc = jnp.zeros((N, C), jnp.float32)
    tsum_nc = jnp.zeros((N, C), jnp.float32)
    ce_num = jnp.float32(0.0)
    ce_den_w = jnp.float32(0.0)
    focal_sum = jnp.float32(0.0)

    if px_main > 0:
        # v7x megacore: give both TensorCores work even when N == 1.
        splits = 2 if (N == 1 and n_tiles >= 2 and n_tiles % 2 == 0) else 1
        tps = n_tiles // splits
        NS = N * splits

        pred4 = pred_flat[:, :, :px_main].reshape(N, C, s_main, _LANES)
        tgt4 = tgt_flat[:, :px_main].reshape(N, 1, s_main, _LANES)

        kernel = functools.partial(
            _combined_loss_kernel,
            has_class_weights=has_cw, use_ce=use_ce, use_dice=use_dice,
            use_focal=use_focal, focal_alpha=float(focal_alpha),
            focal_gamma=float(focal_gamma))

        in_specs = [
            pl.BlockSpec((1, C, s_tile, _LANES),
                         lambda n, sp, s: (n, 0, sp * tps + s, 0)),
            pl.BlockSpec((1, 1, s_tile, _LANES),
                         lambda n, sp, s: (n, 0, sp * tps + s, 0)),
        ]
        inputs = [pred4, tgt4]
        if has_cw:
            wts = jnp.broadcast_to(cw.reshape(1, C, 1, 1), (1, C, 1, _LANES))
            in_specs.append(pl.BlockSpec((1, C, 1, _LANES),
                                         lambda n, sp, s: (0, 0, 0, 0)))
            inputs.append(wts)

        nc_shape = jax.ShapeDtypeStruct((NS, C, 1, _LANES), jnp.float32)
        sc_shape = jax.ShapeDtypeStruct((NS, 1, 1, _LANES), jnp.float32)
        nc_spec = pl.BlockSpec((1, C, 1, _LANES),
                               lambda n, sp, s: (n * splits + sp, 0, 0, 0))
        sc_spec = pl.BlockSpec((1, 1, 1, _LANES),
                               lambda n, sp, s: (n * splits + sp, 0, 0, 0))

        (out_inter, out_psum, out_tsum,
         o_ce_num, o_ce_den, o_foc) = pl.pallas_call(
            kernel,
            out_shape=(nc_shape, nc_shape, nc_shape,
                       sc_shape, sc_shape, sc_shape),
            grid_spec=pltpu.PrefetchScalarGridSpec(
                num_scalar_prefetch=0,
                grid=(N, splits, tps),
                in_specs=in_specs,
                out_specs=(nc_spec, nc_spec, nc_spec,
                           sc_spec, sc_spec, sc_spec),
            ),
            compiler_params=pltpu.CompilerParams(
                dimension_semantics=("parallel", "parallel", "arbitrary"),
                vmem_limit_bytes=int(budget)),
        )(*inputs)

        def _per_nc(a):  # (N*splits, C, 1, 128) -> (N, C)
            return a.sum(axis=(2, 3)).reshape(N, splits, C).sum(axis=1)

        inter_nc = inter_nc + _per_nc(out_inter)
        psum_nc = psum_nc + _per_nc(out_psum)
        tsum_nc = tsum_nc + _per_nc(out_tsum)
        ce_num = ce_num + o_ce_num.sum()
        ce_den_w = ce_den_w + o_ce_den.sum()
        focal_sum = focal_sum + o_foc.sum()

    if px_main < HW:
        # Remainder pixels (HW % 128 plus any leftover rows): tiny, handled in
        # plain JAX so the Pallas hot loop stays completely maskless.
        t_i, t_p, t_t, t_cn, t_cd, t_f = _tail_partials_jax(
            pred_flat[:, :, px_main:], tgt_flat[:, px_main:], cw,
            use_ce, use_dice, use_focal,
            float(focal_alpha), float(focal_gamma))
        inter_nc = inter_nc + t_i
        psum_nc = psum_nc + t_p
        tsum_nc = tsum_nc + t_t
        ce_num = ce_num + t_cn
        ce_den_w = ce_den_w + t_cd
        focal_sum = focal_sum + t_f

    # Final scalar combine from the (N, C) / scalar partial sums.
    loss = jnp.float32(0.0)
    if use_ce:
        den = ce_den_w if has_cw else jnp.float32(N * HW)
        loss = loss + ce_weight * (ce_num / den)
    if use_dice:
        dice = (2.0 * inter_nc + smooth) / (psum_nc + tsum_nc + smooth)
        loss = loss + dice_weight * (1.0 - jnp.mean(dice))
    if use_focal:
        loss = loss + focal_weight * (focal_sum / jnp.float32(N * HW))
    return loss


def _reference_loss(pred, target, ce_weight=1.0, dice_weight=1.0,
                    focal_weight=0.0, class_weights=None, smooth=1e-8,
                    focal_alpha=1.0, focal_gamma=2.0):
    """Pure-JAX reference mirroring the PyTorch module."""
    N, C, H, W = pred.shape
    logp = jax.nn.log_softmax(pred.astype(jnp.float32), axis=1)
    onehot = jax.nn.one_hot(target, C, axis=1, dtype=jnp.float32)
    ce_pix = -jnp.sum(onehot * logp, axis=1)
    loss = 0.0
    if ce_weight > 0:
        if class_weights is not None:
            w = jnp.asarray(class_weights, jnp.float32)
            w_pix = w[target]
            ce = jnp.sum(w_pix * ce_pix) / jnp.sum(w_pix)
        else:
            ce = jnp.mean(ce_pix)
        loss = loss + ce_weight * ce
    if dice_weight > 0:
        p = jnp.exp(logp)
        pf = p.reshape(N, C, -1)
        tf = onehot.reshape(N, C, -1)
        inter = (pf * tf).sum(-1)
        union = pf.sum(-1) + tf.sum(-1)
        dice = (2.0 * inter + smooth) / (union + smooth)
        loss = loss + dice_weight * (1.0 - dice.mean())
    if focal_weight > 0:
        pt = jnp.exp(-ce_pix)
        fl = jnp.mean(focal_alpha * (1.0 - pt) ** focal_gamma * ce_pix)
        loss = loss + focal_weight * fl
    return loss


if __name__ == "__main__":
    key = jax.random.PRNGKey(0)
    k1, k2, k3, k4, k5, k6 = jax.random.split(key, 6)

    # Case 1: module defaults (ce=1, dice=1, focal=0), (N, C, H, W)=(2,4,16,16).
    N, C, H, W = 2, 4, 16, 16
    pred1 = jax.random.normal(k1, (N, C, H, W), jnp.float32)
    tgt1 = jax.random.randint(k2, (N, H, W), 0, C, jnp.int32)
    out1 = jax.block_until_ready(
        combined_segmentation_loss(pred1, tgt1, ce_weight=1.0, dice_weight=1.0,
                                   focal_weight=0.0))
    ref1 = _reference_loss(pred1, tgt1, 1.0, 1.0, 0.0)
    assert jnp.allclose(out1, ref1, rtol=5e-3, atol=2e-3), (out1, ref1)

    # Case 2: all three terms + class weights, C not a multiple of 8, several
    # spatial tiles (max_tile_rows=8 -> 3 tiles) to exercise accumulation.
    N, C, H, W = 2, 5, 48, 64
    pred2 = jax.random.normal(k3, (N, C, H, W), jnp.float32)
    tgt2 = jax.random.randint(k4, (N, H, W), 0, C, jnp.int32)
    cw = [0.5, 1.0, 1.5, 2.0, 0.75]
    out2 = jax.block_until_ready(
        combined_segmentation_loss(pred2, tgt2, ce_weight=1.0, dice_weight=0.5,
                                   focal_weight=0.5, class_weights=cw,
                                   max_tile_rows=8))
    ref2 = _reference_loss(pred2, tgt2, 1.0, 0.5, 0.5, class_weights=cw)
    assert jnp.allclose(out2, ref2, rtol=5e-3, atol=2e-3), (out2, ref2)

    # Case 3: HW not a multiple of 128 (kernel main + pure-JAX tail), N == 1.
    N, C, H, W = 1, 3, 18, 18
    pred3 = jax.random.normal(k5, (N, C, H, W), jnp.float32)
    tgt3 = jax.random.randint(k6, (N, H, W), 0, C, jnp.int32)
    out3 = jax.block_until_ready(
        combined_segmentation_loss(pred3, tgt3, ce_weight=1.0, dice_weight=1.0,
                                   focal_weight=0.0))
    ref3 = _reference_loss(pred3, tgt3, 1.0, 1.0, 0.0)
    assert jnp.allclose(out3, ref3, rtol=5e-3, atol=2e-3), (out3, ref3)

    print("KERNEL_OK")
</pallas_src>

<mosaic_0001>
module attributes {stable_mosaic.version = 11 : i64} {
  func.func @_combined_loss_kernel(%arg0: i32, %arg1: i32, %arg2: i32, %arg3: memref<1x4x2x128xf32, #tpu.memory_space<vmem>>, %arg4: memref<1x1x2x128xi32, #tpu.memory_space<vmem>>, %arg5: memref<1x4x1x128xf32, #tpu.memory_space<vmem>>, %arg6: memref<1x4x1x128xf32, #tpu.memory_space<vmem>>, %arg7: memref<1x4x1x128xf32, #tpu.memory_space<vmem>>, %arg8: memref<1x1x1x128xf32, #tpu.memory_space<vmem>>, %arg9: memref<1x1x1x128xf32, #tpu.memory_space<vmem>>, %arg10: memref<1x1x1x128xf32, #tpu.memory_space<vmem>>) attributes {dimension_semantics = [#tpu.dimension_semantics<parallel>, #tpu.dimension_semantics<parallel>, #tpu.dimension_semantics<arbitrary>], iteration_bounds = array<i64: 2, 1, 1>, scalar_prefetch = 0 : i64, scratch_operands = 0 : i64, tpu.core_type = #tpu.core_type<tc>, window_params = [{transform_indices = @transform_0, window_bounds = array<i64: 1, 4, 2, 128>}, {transform_indices = @transform_1, window_bounds = array<i64: 1, 1, 2, 128>}, {transform_indices = @transform_2, window_bounds = array<i64: 1, 4, 1, 128>}, {transform_indices = @transform_3, window_bounds = array<i64: 1, 4, 1, 128>}, {transform_indices = @transform_4, window_bounds = array<i64: 1, 4, 1, 128>}, {transform_indices = @transform_5, window_bounds = array<i64: 1, 1, 1, 128>}, {transform_indices = @transform_6, window_bounds = array<i64: 1, 1, 1, 128>}, {transform_indices = @transform_7, window_bounds = array<i64: 1, 1, 1, 128>}]} {
    %c0_i32 = arith.constant 0 : i32
    %0 = arith.cmpi eq, %arg2, %c0_i32 : i32
    %1 = arith.extui %0 : i1 to i32
    %c0_i32_0 = arith.constant 0 : i32
    %2 = arith.cmpi ne, %1, %c0_i32_0 : i32
    scf.if %2 {
      %cst_50 = arith.constant 0.000000e+00 : f32
      %50 = vector.broadcast %cst_50 : f32 to vector<1x4x1x128xf32>
      %c0_51 = arith.constant 0 : index
      %c0_52 = arith.constant 0 : index
      %c0_53 = arith.constant 0 : index
      %c0_54 = arith.constant 0 : index
      %51 = vector.load %arg5[%c0_51, %c0_52, %c0_53, %c0_54] : memref<1x4x1x128xf32, #tpu.memory_space<vmem>>, vector<1x4x1x128xf32>
      tpu.vector_store %arg5[%c0_51, %c0_52, %c0_53, %c0_54], %50 {strides = array<i32>} : memref<1x4x1x128xf32, #tpu.memory_space<vmem>>, vector<1x4x1x128xf32>,
      %cst_55 = arith.constant 0.000000e+00 : f32
      %52 = vector.broadcast %cst_55 : f32 to vector<1x4x1x128xf32>
      %c0_56 = arith.constant 0 : index
      %c0_57 = arith.constant 0 : index
      %c0_58 = arith.constant 0 : index
      %c0_59 = arith.constant 0 : index
      %53 = vector.load %arg6[%c0_56, %c0_57, %c0_58, %c0_59] : memref<1x4x1x128xf32, #tpu.memory_space<vmem>>, vector<1x4x1x128xf32>
      tpu.vector_store %arg6[%c0_56, %c0_57, %c0_58, %c0_59], %52 {strides = array<i32>} : memref<1x4x1x128xf32, #tpu.memory_space<vmem>>, vector<1x4x1x128xf32>,
      %cst_60 = arith.constant 0.000000e+00 : f32
      %54 = vector.broadcast %cst_60 : f32 to vector<1x4x1x128xf32>
      %c0_61 = arith.constant 0 : index
      %c0_62 = arith.constant 0 : index
      %c0_63 = arith.constant 0 : index
      %c0_64 = arith.constant 0 : index
      %55 = vector.load %arg7[%c0_61, %c0_62, %c0_63, %c0_64] : memref<1x4x1x128xf32, #tpu.memory_space<vmem>>, vector<1x4x1x128xf32>
      tpu.vector_store %arg7[%c0_61, %c0_62, %c0_63, %c0_64], %54 {strides = array<i32>} : memref<1x4x1x128xf32, #tpu.memory_space<vmem>>, vector<1x4x1x128xf32>,
      %cst_65 = arith.constant 0.000000e+00 : f32
      %56 = vector.broadcast %cst_65 : f32 to vector<1x1x1x128xf32>
      %c0_66 = arith.constant 0 : index
      %c0_67 = arith.constant 0 : index
      %c0_68 = arith.constant 0 : index
      %c0_69 = arith.constant 0 : index
      %57 = vector.load %arg8[%c0_66, %c0_67, %c0_68, %c0_69] : memref<1x1x1x128xf32, #tpu.memory_space<vmem>>, vector<1x1x1x128xf32>
      tpu.vector_store %arg8[%c0_66, %c0_67, %c0_68, %c0_69], %56 {strides = array<i32>} : memref<1x1x1x128xf32, #tpu.memory_space<vmem>>, vector<1x1x1x128xf32>,
      %cst_70 = arith.constant 0.000000e+00 : f32
      %58 = vector.broadcast %cst_70 : f32 to vector<1x1x1x128xf32>
      %c0_71 = arith.constant 0 : index
      %c0_72 = arith.constant 0 : index
      %c0_73 = arith.constant 0 : index
      %c0_74 = arith.constant 0 : index
      %59 = vector.load %arg9[%c0_71, %c0_72, %c0_73, %c0_74] : memref<1x1x1x128xf32, #tpu.memory_space<vmem>>, vector<1x1x1x128xf32>
      tpu.vector_store %arg9[%c0_71, %c0_72, %c0_73, %c0_74], %58 {strides = array<i32>} : memref<1x1x1x128xf32, #tpu.memory_space<vmem>>, vector<1x1x1x128xf32>,
      %cst_75 = arith.constant 0.000000e+00 : f32
      %60 = vector.broadcast %cst_75 : f32 to vector<1x1x1x128xf32>
      %c0_76 = arith.constant 0 : index
      %c0_77 = arith.constant 0 : index
      %c0_78 = arith.constant 0 : index
      %c0_79 = arith.constant 0 : index
      %61 = vector.load %arg10[%c0_76, %c0_77, %c0_78, %c0_79] : memref<1x1x1x128xf32, #tpu.memory_space<vmem>>, vector<1x1x1x128xf32>
      tpu.vector_store %arg10[%c0_76, %c0_77, %c0_78, %c0_79], %60 {strides = array<i32>} : memref<1x1x1x128xf32, #tpu.memory_space<vmem>>, vector<1x1x1x128xf32>,
    } else {
    }
    %c0 = arith.constant 0 : index
    %c0_1 = arith.constant 0 : index
    %c0_2 = arith.constant 0 : index
    %c0_3 = arith.constant 0 : index
    %3 = vector.load %arg3[%c0, %c0_1, %c0_2, %c0_3] : memref<1x4x2x128xf32, #tpu.memory_space<vmem>>, vector<1x4x2x128xf32>
    %c0_4 = arith.constant 0 : index
    %c0_5 = arith.constant 0 : index
    %c0_6 = arith.constant 0 : index
    %c0_7 = arith.constant 0 : index
    %4 = vector.load %arg4[%c0_4, %c0_5, %c0_6, %c0_7] : memref<1x1x2x128xi32, #tpu.memory_space<vmem>>, vector<1x1x2x128xi32>
    %5 = tpu.iota {dimensions = array<i32: 1>} : vector<1x4x2x128xi32>
    %6 = vector.broadcast %4 : vector<1x1x2x128xi32> to vector<1x4x2x128xi32>
    %7 = arith.cmpi eq, %5, %6 : vector<1x4x2x128xi32>
    %cst = arith.constant dense<0xFF800000> : vector<1x2x128xf32>
    %8 = vector.multi_reduction <maximumf>, %3, %cst [1] : vector<1x4x2x128xf32> to vector<1x2x128xf32>
    %9 = vector.shape_cast %8 : vector<1x2x128xf32> to vector<1x1x2x128xf32>
    %10 = vector.broadcast %9 : vector<1x1x2x128xf32> to vector<1x4x2x128xf32>
    %11 = arith.subf %3, %10 : vector<1x4x2x128xf32>
    %12 = math.exp %11 : vector<1x4x2x128xf32>
    %cst_8 = arith.constant dense<0.000000e+00> : vector<1x2x128xf32>
    %13 = vector.multi_reduction <add>, %12, %cst_8 [1] : vector<1x4x2x128xf32> to vector<1x2x128xf32>
    %14 = vector.shape_cast %13 : vector<1x2x128xf32> to vector<1x1x2x128xf32>
    %15 = tpu.reciprocal %14 {approx = true} : vector<1x1x2x128xf32> -> vector<1x1x2x128xf32>
    %16 = vector.broadcast %15 : vector<1x1x2x128xf32> to vector<1x4x2x128xf32>
    %17 = arith.mulf %12, %16 : vector<1x4x2x128xf32>
    %cst_9 = arith.constant 0.000000e+00 : f32
    %18 = vector.broadcast %cst_9 : f32 to vector<1x4x2x128xf32>
    %19 = arith.select %7, %17, %18 : vector<1x4x2x128xi1>, vector<1x4x2x128xf32>
    %20 = math.log %14 : vector<1x1x2x128xf32>
    %21 = arith.addf %20, %9 : vector<1x1x2x128xf32>
    %cst_10 = arith.constant 0.000000e+00 : f32
    %22 = vector.broadcast %cst_10 : f32 to vector<1x4x2x128xf32>
    %23 = arith.select %7, %3, %22 : vector<1x4x2x128xi1>, vector<1x4x2x128xf32>
    %cst_11 = arith.constant dense<0.000000e+00> : vector<1x2x128xf32>
    %24 = vector.multi_reduction <add>, %23, %cst_11 [1] : vector<1x4x2x128xf32> to vector<1x2x128xf32>
    %25 = vector.shape_cast %24 : vector<1x2x128xf32> to vector<1x1x2x128xf32>
    %26 = arith.subf %21, %25 : vector<1x1x2x128xf32>
    %c0_12 = arith.constant 0 : index
    %c0_13 = arith.constant 0 : index
    %c0_14 = arith.constant 0 : index
    %c0_15 = arith.constant 0 : index
    %27 = vector.load %arg8[%c0_12, %c0_13, %c0_14, %c0_15] : memref<1x1x1x128xf32, #tpu.memory_space<vmem>>, vector<1x1x1x128xf32>
    %cst_16 = arith.constant dense<0.000000e+00> : vector<1x1x128xf32>
    %28 = vector.multi_reduction <add>, %26, %cst_16 [2] : vector<1x1x2x128xf32> to vector<1x1x128xf32>
    %29 = vector.shape_cast %28 : vector<1x1x128xf32> to vector<1x1x1x128xf32>
    %30 = arith.addf %27, %29 : vector<1x1x1x128xf32>
    %c0_17 = arith.constant 0 : index
    %c0_18 = arith.constant 0 : index
    %c0_19 = arith.constant 0 : index
    %c0_20 = arith.constant 0 : index
    %31 = vector.load %arg8[%c0_17, %c0_18, %c0_19, %c0_20] : memref<1x1x1x128xf32, #tpu.memory_space<vmem>>, vector<1x1x1x128xf32>
    tpu.vector_store %arg8[%c0_17, %c0_18, %c0_19, %c0_20], %30 {strides = array<i32>} : memref<1x1x1x128xf32, #tpu.memory_space<vmem>>, vector<1x1x1x128xf32>,
    %c0_21 = arith.constant 0 : index
    %c0_22 = arith.constant 0 : index
    %c0_23 = arith.constant 0 : index
    %c0_24 = arith.constant 0 : index
    %32 = vector.load %arg5[%c0_21, %c0_22, %c0_23, %c0_24] : memref<1x4x1x128xf32, #tpu.memory_space<vmem>>, vector<1x4x1x128xf32>
    %cst_25 = arith.constant dense<0.000000e+00> : vector<1x4x128xf32>
    %33 = vector.multi_reduction <add>, %19, %cst_25 [2] : vector<1x4x2x128xf32> to vector<1x4x128xf32>
    %34 = vector.shape_cast %33 : vector<1x4x128xf32> to vector<1x4x1x128xf32>
    %35 = arith.addf %32, %34 : vector<1x4x1x128xf32>
    %c0_26 = arith.constant 0 : index
    %c0_27 = arith.constant 0 : index
    %c0_28 = arith.constant 0 : index
    %c0_29 = arith.constant 0 : index
    %36 = vector.load %arg5[%c0_26, %c0_27, %c0_28, %c0_29] : memref<1x4x1x128xf32, #tpu.memory_space<vmem>>, vector<1x4x1x128xf32>
    tpu.vector_store %arg5[%c0_26, %c0_27, %c0_28, %c0_29], %35 {strides = array<i32>} : memref<1x4x1x128xf32, #tpu.memory_space<vmem>>, vector<1x4x1x128xf32>,
    %c0_30 = arith.constant 0 : index
    %c0_31 = arith.constant 0 : index
    %c0_32 = arith.constant 0 : index
    %c0_33 = arith.constant 0 : index
    %37 = vector.load %arg6[%c0_30, %c0_31, %c0_32, %c0_33] : memref<1x4x1x128xf32, #tpu.memory_space<vmem>>, vector<1x4x1x128xf32>
    %cst_34 = arith.constant dense<0.000000e+00> : vector<1x4x128xf32>
    %38 = vector.multi_reduction <add>, %17, %cst_34 [2] : vector<1x4x2x128xf32> to vector<1x4x128xf32>
    %39 = vector.shape_cast %38 : vector<1x4x128xf32> to vector<1x4x1x128xf32>
    %40 = arith.addf %37, %39 : vector<1x4x1x128xf32>
    %c0_35 = arith.constant 0 : index
    %c0_36 = arith.constant 0 : index
    %c0_37 = arith.constant 0 : index
    %c0_38 = arith.constant 0 : index
    %41 = vector.load %arg6[%c0_35, %c0_36, %c0_37, %c0_38] : memref<1x4x1x128xf32, #tpu.memory_space<vmem>>, vector<1x4x1x128xf32>
    tpu.vector_store %arg6[%c0_35, %c0_36, %c0_37, %c0_38], %40 {strides = array<i32>} : memref<1x4x1x128xf32, #tpu.memory_space<vmem>>, vector<1x4x1x128xf32>,
    %c0_39 = arith.constant 0 : index
    %c0_40 = arith.constant 0 : index
    %c0_41 = arith.constant 0 : index
    %c0_42 = arith.constant 0 : index
    %42 = vector.load %arg7[%c0_39, %c0_40, %c0_41, %c0_42] : memref<1x4x1x128xf32, #tpu.memory_space<vmem>>, vector<1x4x1x128xf32>
    %cst_43 = arith.constant 1.000000e+00 : f32
    %cst_44 = arith.constant 0.000000e+00 : f32
    %43 = vector.broadcast %cst_43 : f32 to vector<1x4x2x128xf32>
    %44 = vector.broadcast %cst_44 : f32 to vector<1x4x2x128xf32>
    %45 = arith.select %7, %43, %44 : vector<1x4x2x128xi1>, vector<1x4x2x128xf32>
    %cst_45 = arith.constant dense<0.000000e+00> : vector<1x4x128xf32>
    %46 = vector.multi_reduction <add>, %45, %cst_45 [2] : vector<1x4x2x128xf32> to vector<1x4x128xf32>
    %47 = vector.shape_cast %46 : vector<1x4x128xf32> to vector<1x4x1x128xf32>
    %48 = arith.addf %42, %47 : vector<1x4x1x128xf32>
    %c0_46 = arith.constant 0 : index
    %c0_47 = arith.constant 0 : index
    %c0_48 = arith.constant 0 : index
    %c0_49 = arith.constant 0 : index
    %49 = vector.load %arg7[%c0_46, %c0_47, %c0_48, %c0_49] : memref<1x4x1x128xf32, #tpu.memory_space<vmem>>, vector<1x4x1x128xf32>
    tpu.vector_store %arg7[%c0_46, %c0_47, %c0_48, %c0_49], %48 {strides = array<i32>} : memref<1x4x1x128xf32, #tpu.memory_space<vmem>>, vector<1x4x1x128xf32>,
    return
  }
  func.func @transform_0(%arg0: i32, %arg1: i32, %arg2: i32) -> (i32, i32, i32, i32) {
    %c1_i32 = arith.constant 1 : i32
    %0 = arith.muli %arg1, %c1_i32 : i32
    %1 = arith.addi %0, %arg2 : i32
    %c0_i32 = arith.constant 0 : i32
    %c0_i32_0 = arith.constant 0 : i32
    %c0_i32_1 = arith.constant 0 : i32
    return %arg0, %c0_i32, %1, %c0_i32_0 : i32, i32, i32, i32
  }
  func.func @transform_1(%arg0: i32, %arg1: i32, %arg2: i32) -> (i32, i32, i32, i32) {
    %c1_i32 = arith.constant 1 : i32
    %0 = arith.muli %arg1, %c1_i32 : i32
    %1 = arith.addi %0, %arg2 : i32
    %c0_i32 = arith.constant 0 : i32
    %c0_i32_0 = arith.constant 0 : i32
    %c0_i32_1 = arith.constant 0 : i32
    return %arg0, %c0_i32, %1, %c0_i32_0 : i32, i32, i32, i32
  }
  func.func @transform_2(%arg0: i32, %arg1: i32, %arg2: i32) -> (i32, i32, i32, i32) {
    %c1_i32 = arith.constant 1 : i32
    %0 = arith.muli %arg0, %c1_i32 : i32
    %1 = arith.addi %0, %arg1 : i32
    %c0_i32 = arith.constant 0 : i32
    %c0_i32_0 = arith.constant 0 : i32
    %c0_i32_1 = arith.constant 0 : i32
    %c0_i32_2 = arith.constant 0 : i32
    return %1, %c0_i32, %c0_i32_0, %c0_i32_1 : i32, i32, i32, i32
  }
  func.func @transform_3(%arg0: i32, %arg1: i32, %arg2: i32) -> (i32, i32, i32, i32) {
    %c1_i32 = arith.constant 1 : i32
    %0 = arith.muli %arg0, %c1_i32 : i32
    %1 = arith.addi %0, %arg1 : i32
    %c0_i32 = arith.constant 0 : i32
    %c0_i32_0 = arith.constant 0 : i32
    %c0_i32_1 = arith.constant 0 : i32
    %c0_i32_2 = arith.constant 0 : i32
    return %1, %c0_i32, %c0_i32_0, %c0_i32_1 : i32, i32, i32, i32
  }
  func.func @transform_4(%arg0: i32, %arg1: i32, %arg2: i32) -> (i32, i32, i32, i32) {
    %c1_i32 = arith.constant 1 : i32
    %0 = arith.muli %arg0, %c1_i32 : i32
    %1 = arith.addi %0, %arg1 : i32
    %c0_i32 = arith.constant 0 : i32
    %c0_i32_0 = arith.constant 0 : i32
    %c0_i32_1 = arith.constant 0 : i32
    %c0_i32_2 = arith.constant 0 : i32
    return %1, %c0_i32, %c0_i32_0, %c0_i32_1 : i32, i32, i32, i32
  }
  func.func @transform_5(%arg0: i32, %arg1: i32, %arg2: i32) -> (i32, i32, i32, i32) {
    %c1_i32 = arith.constant 1 : i32
    %0 = arith.muli %arg0, %c1_i32 : i32
    %1 = arith.addi %0, %arg1 : i32
    %c0_i32 = arith.constant 0 : i32
    %c0_i32_0 = arith.constant 0 : i32
    %c0_i32_1 = arith.constant 0 : i32
    %c0_i32_2 = arith.constant 0 : i32
    return %1, %c0_i32, %c0_i32_0, %c0_i32_1 : i32, i32, i32, i32
  }
  func.func @transform_6(%arg0: i32, %arg1: i32, %arg2: i32) -> (i32, i32, i32, i32) {
    %c1_i32 = arith.constant 1 : i32
    %0 = arith.muli %arg0, %c1_i32 : i32
    %1 = arith.addi %0, %arg1 : i32
    %c0_i32 = arith.constant 0 : i32
    %c0_i32_0 = arith.constant 0 : i32
    %c0_i32_1 = arith.constant 0 : i32
    %c0_i32_2 = arith.constant 0 : i32
    return %1, %c0_i32, %c0_i32_0, %c0_i32_1 : i32, i32, i32, i32
  }
  func.func @transform_7(%arg0: i32, %arg1: i32, %arg2: i32) -> (i32, i32, i32, i32) {
    %c1_i32 = arith.constant 1 : i32
    %0 = arith.muli %arg0, %c1_i32 : i32
    %1 = arith.addi %0, %arg1 : i32
    %c0_i32 = arith.constant 0 : i32
    %c0_i32_0 = arith.constant 0 : i32
    %c0_i32_1 = arith.constant 0 : i32
    %c0_i32_2 = arith.constant 0 : i32
    return %1, %c0_i32, %c0_i32_0, %c0_i32_1 : i32, i32, i32, i32
  }
}

</mosaic_0001>

<bundles_post_ra>
// kernel: tpu_custom_call.1
= control target key start
LH: loop header
LB: loop body
LE: loop exit
PB: predicated region body
PF: predicated region fallthrough
CT: control target
= control target key end

     0   :  { %s2071_s0 = inlined_call_operand.hbm [shape: f32[2,4,2,128], index: 0, kind: input, shape index: {}]   ;;  %s2072_s1 = inlined_call_operand.hbm [shape: s32[2,1,2,128], index: 1, kind: input, shape index: {}]   ;;  %s2073_s2 = inlined_call_operand.hbm [shape: f32[2,4,1,128], index: 2, kind: output, shape index: {0}]   ;;  %s2074_s3 = inlined_call_operand.hbm [shape: f32[2,4,1,128], index: 3, kind: output, shape index: {1}]   ;;  %s2075_s4 = inlined_call_operand.hbm [shape: f32[2,4,1,128], index: 4, kind: output, shape index: {2}]   ;;  %s2076_s5 = inlined_call_operand.hbm [shape: f32[2,1,1,128], index: 5, kind: output, shape index: {3}]   ;;  %s2077_s6 = inlined_call_operand.hbm [shape: f32[2,1,1,128], index: 6, kind: output, shape index: {4}]   ;;  %s2078_s7 = inlined_call_operand.hbm [shape: f32[2,1,1,128], index: 7, kind: output, shape index: {5}]  }
   0x1   :  { %2088 = sst [smem:[#allocation27_spill]] %s2071_s0 }
   0x2   :  { %2089 = sst [smem:[#allocation28_spill]] %s2072_s1 }
   0x3   :  { %2090 = sst [smem:[#allocation29_spill]] %s2078_s7 }
   0x4   :  { %13 = vsyncpa [#allocation3], 0 }
   0x5   :  { %15 = vsyncpa [#allocation3 + $0x1], 0 }
   0x6   :  { %16 = vsyncpa [#allocation6], 0 }
   0x7   :  { %18 = vsyncpa [#allocation6 + $0x1], 0 }
   0x8   :  { %19 = vsyncpa [#allocation4], 0 }
   0x9   :  { %21 = vsyncpa [#allocation4 + $0x1], 0 }
   0xa   :  { %22 = vsyncpa [#allocation9], 0 }
   0xb   :  { %24 = vsyncpa [#allocation9 + $0x1], 0 }
   0xc   :  { %25 = vsyncpa [#allocation12], 0 }
   0xd   :  { %27 = vsyncpa [#allocation12 + $0x1], 0 }
   0xe   :  { %28 = vsyncpa [#allocation15], 0 }
   0xf   :  { %30 = vsyncpa [#allocation15 + $0x1], 0  ;;  %s1508_s24 = smov 0   ;;  %s1510_s25 = smov 0  }
  0x10   :  { %s1512_s26 = smov 0   ;;  %s1514_s27 = smov 0  }
  0x11   :  { %s1516_s28 = smov 0   ;;  %s1518_s29 = smov 0  }
  0x12 LB: > { %2091 = sst [smem:[#allocation22_spill]] %s1437_s25  ;;  %s1539_s30 = sadd.s32 4294967295, %s1453_s29   ;;  %s1453_s29 = sphi %s1518_s29, %s36_s29   ;;  %s1449_s28 = sphi %s1516_s28, %s2119_s28   ;;  %s1445_s27 = sphi %s1514_s27, %s2118_s27   ;;  %s1441_s26 = sphi %s1512_s26, %s2117_s26   ;;  %s1437_s25 = sphi %s1510_s25, %s2116_s25   ;;  %s1433_s24 = sphi %s1508_s24, %s2115_s24  }
  0x13   : > { %2092 = sst [smem:[#allocation23_spill]] %s1441_s26  ;;  %s2079_s8 = sadd.s32 4294967294, %s1453_s29  }
  0x14   : > { %2093 = sst [smem:[#allocation24_spill]] %s1449_s28  ;;  %s55_s9 = sadd.s32 1, %s1449_s28 }
  0x15   : > { %s66_s10 = sadd.s32 1, %s1441_s26  ;;  %p57_p0 = scmp.ge.s32.totalorder %s55_s9, 2 }
  0x16   : > { %p73_p1 = scmp.ne.s32.totalorder %s1441_s26, %s1437_s25  ;;  %p74_p2 = scmp.eq.s32.totalorder %s1453_s29, 0 }
  0x17   : > { %p79_p3 = scmp.ne.s32.totalorder %s1437_s25, %s1433_s24  ;;  %s2121_s9 = smov (%p57_p0, %s55_s9), 0 }
  0x18   : > { %2094 = sst [smem:[#allocation25_spill]] %s2121_s9  ;;  %p1551_p4 = por %p74_p2, %p73_p1 }
  0x19   : > { %p80_p5 = scmp.eq.s32.totalorder %s1539_s30, 0  ;;  %s61_s12 = ssub.s32 %s1449_s28, %s2121_s9 }
  0x1a   : > { %p135_p6 = scmp.eq.s32.totalorder %s1539_s30, 1  ;;  %p64_p7 = scmp.eq.s32.totalorder %s61_s12, 0 }
  0x1b   : > { %p1559_p8 = por %p80_p5, %p79_p3  ;;  %p141_p10 = scmp.eq.s32.totalorder %s2079_s8, 1 }
  0x1c   : > { %p1563_p9 = por %p135_p6, %p73_p1  ;;  %p1088_p13 = scmp.lt.s32.totalorder %s1453_s29, 2 }
  0x1d   : > { %s2096_s13 = scalar_select %p1559_p8, 1, 0 }
  0x1e   : > { %s2097_s14 = scalar_select %p1563_p9, 1, 0 }
  0x1f   : > { %s1570_s15 = scalar_select %p64_p7, %s1441_s26, %s66_s10  }
  0x20   : > { %p1572_p11 = por %p141_p10, %p79_p3  ;;  %s1579_s17 = sand.u32 1, %s1441_s26  }
  0x21   : > { %2098 = sst [smem:[#allocation26_spill]] %s1570_s15  ;;  %s1017_s18 = sshll.u32 %s1579_s17, 3 }
  0x22   : > { %s2099_s16 = scalar_select %p1572_p11, 1, 0 }
  0x23   : > { %s1042_s19 = sshll.u32 %s1449_s28, 7  ;;  %s2100_s0 = sld [smem:[#allocation27_spill]] }
  0x24   : > { %s305_s23 = scalar_lea.vmem [#allocation2], %s1017_s18  ;;  %p1592_p0 = pnand %p1088_p13, %p1551_p4 }
  0x25   : > { %s314_s10 = sshll.u32 %s305_s23, 4  ;;  %s1588_s10 = int_to_ptr.vmem [resolvable:$true] %s314_s10 }
  0x26   : > { %p1157_p3 = pneg %p1592_p0 }
  0x29   : > { %s1586_s22 = scalar_lea.hbm %s2100_s0, %s1042_s19  ;;  %s1160_s11 = scalar_lea.hbm %s2100_s0, 256 }
  0x2a   : > { %s1155_s20 = scalar_lea.hbm %s1586_s22, 128  ;;  %p1161_p4 = scmp.lt.u32.totalorder %s1586_s22, %s2100_s0 }
  0x2b   : > { %p1156_p2 = scmp.ne.s32.totalorder %s1586_s22, %s1155_s20  ;;  %p1162_p7 = scmp.lt.u32.totalorder %s1160_s11, %s1155_s20 }
  0x2c   : > { %p1164_p13 = scmp.lt.u32.totalorder %s1155_s20, %s1586_s22 }
  0x2d   : > { %p1158_p5 = pnand %p1157_p3, %p1156_p2  ;;  %p1163_p10 = por %p1162_p7, %p1161_p4 }
  0x2f   : > { %p1159_p6 = pneg %p1158_p5  ;;  %p1165_p12 = por %p1164_p13, %p1163_p10 }
  0x31   : > { %p1166_p1 = pnand %p1165_p12, %p1159_p6 }
  0x33   : > { %1169 = shalt.err (!%p1166_p1)
}
  0x34   : > { %s1170_s8 = scalar_lea.vmem %s1588_s10, 128  ;;  %s1455_s18 = smov [#allocation2]  }
  0x35   : > { %p1171_p2 = scmp.ne.s32.totalorder %s1588_s10, %s1170_s8  ;;  %s1175_s19 = sshll.u32 %s1455_s18, 4  ;;  %s1176_s19 = int_to_ptr.vmem [resolvable:$false] %s1175_s19 }
  0x36   : > { %s1177_s21 = scalar_lea.vmem %s1176_s19, 256  ;;  %p1178_p9 = scmp.lt.s32.totalorder %s1588_s10, %s1176_s19 }
  0x37   : > { %p1173_p5 = pnand %p1171_p2, %p1157_p3  ;;  %p1179_p4 = scmp.lt.s32.totalorder %s1177_s21, %s1170_s8 }
  0x39   : > { %p1174_p11 = pneg %p1173_p5  ;;  %p1180_p7 = por %p1179_p4, %p1178_p9 }
  0x3b   : > { %p1181_p10 = pnand %p1180_p7, %p1174_p11 }
  0x3d   : > { %1184 = shalt.err (!%p1181_p10)
}
  0x3e   : > { %s1456_s20 = smov 32   ;;  %s1457_s11 = smov 2  }
  0x3f   : > { %s2102_s23 = scalar_lea.sflag [#allocation3], %s1579_s17  ;;  %p342_p12 = scmp.lt.s32.totalorder %s1453_s29, 3 }
  0x40   : > { %1065 = dma.hbm_to_vmem [thread:$0]  (!%p1592_p0), %s1586_s22, 128, %s1588_s10, %s2102_s23, %s1456_s20, %s1456_s20, %s1457_s11  }
  0x41   : > { %s1020_s8 = sshll.u32 %s1579_s17, 1  ;;  %s1021_s18 = sshll.u32 %s1449_s28, 5 }
  0x42   : > { %p2103_p9 = scmp.ge.s32.totalorder %s1453_s29, 1  ;;  %s2105_s1 = sld [smem:[#allocation28_spill]] }
  0x43   : > { %s328_s15 = scalar_lea.vmem [#allocation5], %s1020_s8  ;;  %s325_s22 = scalar_lea.sflag [#allocation6], %s1579_s17 }
  0x44   : > { %p1630_p11 = pnand %p2103_p9, %p342_p12  ;;  %s337_s26 = sshll.u32 %s328_s15, 4  ;;  %s338_s26 = int_to_ptr.vmem [resolvable:$true] %s337_s26 }
  0x46   : > { %s2104_s19 = scalar_select %p1630_p11, 1, 0 }
  0x48   : > { %s1637_s9 = scalar_lea.hbm %s2105_s1, %s1021_s18  ;;  %s1190_s0 = scalar_lea.hbm %s2105_s1, 64 }
  0x49   : > { %s1185_s10 = scalar_lea.hbm %s1637_s9, 32  ;;  %p1191_p2 = scmp.lt.u32.totalorder %s1637_s9, %s2105_s1 }
  0x4a   : > { %p1186_p1 = scmp.ne.s32.totalorder %s1637_s9, %s1185_s10  ;;  %p1192_p5 = scmp.lt.u32.totalorder %s1190_s0, %s1185_s10 }
  0x4b   : > { %p1194_p7 = scmp.lt.u32.totalorder %s1185_s10, %s1637_s9 }
  0x4c   : > { %p1188_p6 = pnand %p1186_p1, %p1157_p3  ;;  %p1193_p4 = por %p1192_p5, %p1191_p2 }
  0x4e   : > { %p1189_p13 = pneg %p1188_p6  ;;  %p1195_p10 = por %p1194_p7, %p1193_p4 }
  0x50   : > { %p1196_p12 = pnand %p1195_p10, %p1189_p13 }
  0x52   : > { %1199 = shalt.err (!%p1196_p12)
}
  0x53   : > { %s1200_s15 = scalar_lea.vmem %s338_s26, 32  ;;  %s1458_s17 = smov [#allocation5]  }
  0x54   : > { %p1201_p9 = scmp.ne.s32.totalorder %s338_s26, %s1200_s15  ;;  %s1205_s8 = sshll.u32 %s1458_s17, 4  ;;  %s1206_s8 = int_to_ptr.vmem [resolvable:$false] %s1205_s8 }
  0x55   : > { %s1207_s21 = scalar_lea.vmem %s1206_s8, 64  ;;  %p1208_p8 = scmp.lt.s32.totalorder %s338_s26, %s1206_s8 }
  0x56   : > { %p1203_p1 = pnand %p1201_p9, %p1157_p3  ;;  %p1209_p11 = scmp.lt.s32.totalorder %s1207_s21, %s1200_s15 }
  0x58   : > { %p1204_p6 = pneg %p1203_p1  ;;  %p1210_p2 = por %p1209_p11, %p1208_p8 }
  0x5a   : > { %p1211_p5 = pnand %p1210_p2, %p1204_p6 }
  0x5c   : > { %1214 = shalt.err (!%p1211_p5)
}
  0x5d   : > { %1068 = dma.hbm_to_vmem [thread:$0]  (!%p1592_p0), %s1637_s9, 32, %s338_s26, %s325_s22  }
  0x5e   : > { %p2106_p13 = scmp.ne.s32.totalorder %s2104_s19, 0 }
  0x5f   : > { %s1662_s10 = sand.u32 (!%p2106_p13), 1, %s1437_s25   ;;  %p2107_p8 = scmp.ne.s32.totalorder (!%p2106_p13), %s2096_s13, 0 }
  0x60   : > { %346 = sbr.rel (%p2106_p13) target bundleno = 287 (0x11f), region = 28  ;;  %s1023_s20 = sshll.u32 (!%p2106_p13), %s1662_s10, 3 }
  0x61   : > { %s349_s11 = scalar_lea.sflag (!%p2106_p13), [#allocation3], %s1662_s10  ;;  %s1666_s0 = scalar_lea.vmem (!%p2106_p13), [#allocation2], %s1023_s20 }
  0x67   : > { %1408 = dma.done.wait (%p2107_p8), %s349_s11, 128  }
  0x68   : > { %1410 = vsyncadd (%p2107_p8), %s349_s11, 4294967168  ;;  %s1024_s26 = sshll.u32 %s1662_s10, 1  ;;  %s358_s9 = scalar_lea.sflag [#allocation6], %s1662_s10 }
  0x69   : > { %s1674_s12 = scalar_lea.vmem [#allocation5], %s1024_s26 }
  0x6a   : > { %1412 = dma.done.wait (%p2107_p8), %s358_s9, 32  }
  0x6b   : > { %1414 = vsyncadd (%p2107_p8), %s358_s9, 4294967264  ;;  %s1025_s19 = sshll.u32 %s1662_s10, 2  ;;  %s1682_s22 = scalar_lea.vmem [#allocation11], %s1662_s10  ;;  %v1459_v0 = vmov 0.0   ;;  %vm455_vm0 = vcmask 1041408  }
  0x6c   : > { %443 = vst [vmem:[%s1682_s22] sm:$0x1] %v1459_v0  ;;  %s1685_s23 = scalar_lea.vmem [#allocation8], %s1025_s19  ;;  %s1691_s13 = scalar_lea.vmem [#allocation7], %s1025_s19  ;;  %v1708_v1 = vld [vmem:[%s1666_s0] sm:$0x3] }
  0x6d   : > { %435 = vst [vmem:[%s1685_s23] sm:$0x1] %v1459_v0  ;;  %436 = vst [vmem:[%s1685_s23 + $0x1] sm:$0x1] %v1459_v0  ;;  %s1697_s18 = scalar_lea.vmem [#allocation10], %s1025_s19  ;;  %s2084_s15 = scalar_lea.vmem [#allocation13], %s1662_s10  ;;  %v456_v5 = vsel %vm455_vm0, %v1708_v1, -inf }
  0x6e   : > { %437 = vst [vmem:[%s1685_s23 + $0x2] sm:$0x1] %v1459_v0  ;;  %438 = vst [vmem:[%s1685_s23 + $0x3] sm:$0x1] %v1459_v0  ;;  %s418_s17 = scalar_lea.vmem [#allocation14], %s1662_s10  ;;  %s1756_s21 = sshll.u32 %s1445_s27, 4 }
  0x6f   : > { %431 = vst [vmem:[%s1691_s13] sm:$0x1] %v1459_v0  ;;  %432 = vst [vmem:[%s1691_s13 + $0x1] sm:$0x1] %v1459_v0  ;;  %v1711_v2 = vld [vmem:[%s1666_s0 + $0x2] sm:$0x3]  ;;  %s756_s8 = sshll.u32 %s418_s17, 4  ;;  %s1758_s8 = int_to_ptr.vmem [resolvable:$true] %s756_s8 }
  0x70   : > { %433 = vst [vmem:[%s1691_s13 + $0x2] sm:$0x1] %v1459_v0  ;;  %434 = vst [vmem:[%s1691_s13 + $0x3] sm:$0x1] %v1459_v0  ;;  %v1714_v3 = vld [vmem:[%s1666_s0 + $0x4] sm:$0x3] }
  0x71   : > { %439 = vst [vmem:[%s1697_s18] sm:$0x1] %v1459_v0  ;;  %440 = vst [vmem:[%s1697_s18 + $0x1] sm:$0x1] %v1459_v0  ;;  %v1717_v4 = vld [vmem:[%s1666_s0 + $0x6] sm:$0x3]  ;;  %v457_v6 = vsel %vm455_vm0, %v1711_v2, -inf }
  0x72   : > { %441 = vst [vmem:[%s1697_s18 + $0x2] sm:$0x1] %v1459_v0  ;;  %442 = vst [vmem:[%s1697_s18 + $0x3] sm:$0x1] %v1459_v0  ;;  %v458_v7 = vsel %vm455_vm0, %v1714_v3, -inf  ;;  %v459_v8 = vsel %vm455_vm0, %v1717_v4, -inf  ;;  %v460_v9 = vmax.f32 %v456_v5, %v457_v6 }
  0x73   : > { %444 = vst [vmem:[%s2084_s15] sm:$0x1] %v1459_v0  ;;  %445 = vst [vmem:[%s418_s17] sm:$0x1] %v1459_v0  ;;  %v1728_v10 = vld [vmem:[%s1674_s12] sm:$0x3]  ;;  %v461_v11 = vmax.f32 %v458_v7, %v459_v8  ;;  %s2108_s7 = sld [smem:[#allocation29_spill]]  ;;  %s664_s26 = scalar_lea.sflag [#allocation15], %s1662_s10 }
  0x74   : > { %vm451_vm1 = vcmp.eq.s32.totalorder %v1728_v10, 0  ;;  %vm452_vm2 = vcmp.eq.s32.totalorder %v1728_v10, 1  ;;  %vm453_vm3 = vcmp.eq.s32.totalorder %v1728_v10, 2  ;;  %vm454_vm4 = vcmp.eq.s32.totalorder %v1728_v10, 3  ;;  %s1215_s9 = scalar_lea.vmem %s1758_s8, 16  ;;  %p2109_p3 = scmp.ne.s32.totalorder %s2097_s14, 0 }
  0x75   : > { %v1730_v12 = vmax.f32 %v460_v9, %v461_v11  ;;  %v600_v17 = vsel %vm451_vm1, 1.0, %v1459_v0  ;;  %v601_v18 = vsel %vm452_vm2, 1.0, %v1459_v0  ;;  %v602_v19 = vsel %vm453_vm3, 1.0, %v1459_v0  ;;  %p1216_p0 = scmp.ne.s32.totalorder %s1758_s8, %s1215_s9  ;;  %s1460_s12 = smov [#allocation14]  }
  0x76   : > { %v604_v24 = vsel %vm455_vm0, %v600_v17, 0.0  ;;  %v611_v25 = vsel %vm455_vm0, %v601_v18, 0.0  ;;  %v618_v28 = vsel %vm455_vm0, %v602_v19, 0.0  ;;  %v603_v30 = vsel %vm454_vm4, 1.0, %v1459_v0  ;;  %s1219_s19 = sshll.u32 %s1460_s12, 4  ;;  %s1220_s19 = int_to_ptr.vmem [resolvable:$false] %s1219_s19 }
  0x77   : > { %v463_v13 = vsub.f32 %v1708_v1, %v1730_v12  ;;  %v464_v14 = vsub.f32 %v1711_v2, %v1730_v12  ;;  %v465_v15 = vsub.f32 %v1714_v3, %v1730_v12  ;;  %v466_v16 = vsub.f32 %v1717_v4, %v1730_v12  ;;  %p1217_p11 = pnand %p1216_p0, %p2109_p3  ;;  %s1221_s17 = scalar_lea.vmem %s1220_s19, 32 }
  0x78   : > { %v605_v26 = vrot.slane %v604_v24, 4  ;;  %v612_v27 = vrot.slane %v611_v25, 4  ;;  %v619_v29 = vrot.slane %v618_v28, 4  ;;  %v625_v33 = vsel %vm455_vm0, %v603_v30, 0.0  ;;  %p1222_p7 = scmp.lt.s32.totalorder %s1758_s8, %s1220_s19  ;;  %p1223_p10 = scmp.lt.s32.totalorder %s1221_s17, %s1215_s9 }
  0x79   : > { %v467_v20 = vmul.f32 1.442695, %v463_v13  ;;  %v469_v21 = vmul.f32 1.442695, %v464_v14  ;;  %v471_v22 = vmul.f32 1.442695, %v465_v15  ;;  %s1765_s0 = scalar_lea.hbm %s2108_s7, %s1756_s21  ;;  %p1218_p4 = pneg %p1217_p11 }
  0x7a   : > { %v473_v23 = vmul.f32 1.442695, %v466_v16  ;;  %v606_v31 = vadd.f32 %v605_v26, %v604_v24  ;;  %v613_v32 = vadd.f32 %v612_v27, %v611_v25  ;;  %v620_v34 = vadd.f32 %v619_v29, %v618_v28  ;;  %p1224_p12 = por %p1223_p10, %p1222_p7 }
  0x7b   : > { %1143 = vpow2.f32 %v467_v20  ;;  %v626_v35 = vrot.slane %v625_v33, 4 }
  0x7c   : > { %1145 = vpow2.f32 %v469_v21  ;;  %v607_v36 = vrot.slane %v606_v31, 2  ;;  %v614_v37 = vrot.slane %v613_v32, 2  ;;  %v621_v38 = vrot.slane %v620_v34, 2  ;;  %p1225_p9 = pnand %p1224_p12, %p1218_p4 }
  0x7d   : > { %1147 = vpow2.f32 %v471_v22  ;;  %v627_v39 = vadd.f32 %v626_v35, %v625_v33 }
  0x7e   : > { %1149 = vpow2.f32 %v473_v23 }
  0x7f   : > { %1228 = shalt.err (!%p1225_p9)
}
  0x80   : > { %s1229_s20 = scalar_lea.hbm %s1765_s0, 16  ;;  %s1233_s12 = scalar_lea.hbm %s2108_s7, 32 }
  0x81   : > { %p1230_p1 = scmp.ne.s32.totalorder %s1765_s0, %s1229_s20  ;;  %p1234_p5 = scmp.lt.u32.totalorder %s1765_s0, %s2108_s7 }
  0x82   : > { %p1235_p13 = scmp.lt.u32.totalorder %s1233_s12, %s1229_s20  ;;  %p1237_p0 = scmp.lt.u32.totalorder %s1229_s20, %s1765_s0 }
  0x83   : > { %p1231_p6 = pnand %p1230_p1, %p2109_p3 }
  0x84   : > { %p1236_p8 = por %p1235_p13, %p1234_p5 }
  0x85   : > { %p1232_p2 = pneg %p1231_p6 }
  0x86   : > { %p1238_p11 = por %p1237_p0, %p1236_p8 }
  0x88   : > { %p1239_p4 = pnand %p1238_p11, %p1232_p2 }
  0x8a   : > { %1242 = shalt.err (!%p1239_p4)
}
  0x8b   : > { %1055 = dma.vmem_to_hbm [thread:$0]  (%p2109_p3), %s1758_s8, 16, %s1765_s0, %s664_s26   ;;  %v608_v40 = vadd.f32 %v607_v36, %v606_v31  ;;  %v615_v41 = vadd.f32 %v614_v37, %v613_v32  ;;  %v622_v42 = vadd.f32 %v621_v38, %v620_v34  ;;  %v628_v43 = vrot.slane %v627_v39, 2  ;;  %v596_v46 = vld [vmem:[%s1697_s18] sm:$0x1]  ;;  %v597_v47 = vld [vmem:[%s1697_s18 + $0x1] sm:$0x1]  ;;  %v1144_v50 = vpop.eup %1143 }
  0x8c   : > { %v598_v53 = vld [vmem:[%s1697_s18 + $0x2] sm:$0x1]  ;;  %v1146_v54 = vpop.eup %1145  ;;  %v475_v55 = vsel %vm455_vm0, %v1144_v50, 0.0  ;;  %v599_v62 = vld [vmem:[%s1697_s18 + $0x3] sm:$0x1]  ;;  %v494_v14 = vsel %vm451_vm1, %v1708_v1, 0.0  ;;  %s1886_s26 = scalar_lea.hbm %s2076_s5, %s1756_s21 }
  0x8d   : > { %v609_v44 = vrot.slane %v608_v40, 1  ;;  %v616_v45 = vrot.slane %v615_v41, 1  ;;  %v623_v48 = vrot.slane %v622_v42, 1  ;;  %v629_v49 = vadd.f32 %v628_v43, %v627_v39  ;;  %v1148_v58 = vpop.eup %1147  ;;  %s2086_s1 = sand.u32 1, %s1539_s30   ;;  %s2110_s15 = scalar_lea.vmem [#allocation13], %s1662_s10 }
  0x8e   : > { %v476_v59 = vsel %vm455_vm0, %v1146_v54, 0.0  ;;  %v1150_v63 = vpop.eup %1149  ;;  %v478_v5 = vsel %vm455_vm0, %v1148_v58, 0.0  ;;  %v495_v15 = vsel %vm452_vm2, %v1711_v2, 0.0  ;;  %v498_v16 = vsel %vm455_vm0, %v494_v14, 0.0  ;;  %s1839_s8 = sshll.u32 %s2110_s15, 4  ;;  %s1842_s0 = sshll.u32 %s1445_s27, 6  ;;  %s1946_s8 = int_to_ptr.vmem [resolvable:$true] %s1839_s8 }
  0x8f   : > { %v610_v51 = vadd.f32 %v609_v44, %v608_v40  ;;  %v617_v52 = vadd.f32 %v616_v45, %v615_v41  ;;  %v624_v56 = vadd.f32 %v623_v48, %v622_v42  ;;  %v630_v57 = vrot.slane %v629_v49, 1  ;;  %s1851_s9 = scalar_lea.hbm %s2074_s3, %s1842_s0  ;;  %s694_s17 = sshll.u32 %s1685_s23, 4  ;;  %s1864_s17 = int_to_ptr.vmem [resolvable:$true] %s694_s17 }
  0x90   : > { %v477_v0 = vadd.f32 %v476_v59, %v475_v55  ;;  %v480_v8 = vsel %vm455_vm0, %v1150_v63, 0.0  ;;  %v499_v17 = vsel %vm455_vm0, %v495_v15, 0.0  ;;  %v496_v18 = vsel %vm453_vm3, %v1714_v3, 0.0  ;;  %s1858_s12 = scalar_lea.hbm %s2075_s4, %s1842_s0  ;;  %s711_s19 = sshll.u32 %s1697_s18, 4  ;;  %s1873_s19 = int_to_ptr.vmem [resolvable:$true] %s711_s19 }
  0x91   : > { %v632_v60 = vadd.f32 %v610_v51, %v596_v46  ;;  %v633_v61 = vadd.f32 %v617_v52, %v597_v47  ;;  %v634_v6 = vadd.f32 %v624_v56, %v598_v53  ;;  %v631_v7 = vadd.f32 %v630_v57, %v629_v49  ;;  %s728_s15 = sshll.u32 %s1682_s22, 4  ;;  %s1243_s20 = scalar_lea.vmem %s1864_s17, 64  ;;  %s1888_s15 = int_to_ptr.vmem [resolvable:$true] %s728_s15 }
  0x92   : > { %v479_v9 = vadd.f32 %v478_v5, %v477_v0  ;;  %v500_v19 = vadd.f32 %v499_v17, %v498_v16  ;;  %v501_v20 = vsel %vm455_vm0, %v496_v18, 0.0  ;;  %v497_v1 = vsel %vm454_vm4, %v1717_v4, 0.0  ;;  %v557_v5 = vld [vmem:[%s1685_s23 + $0x1] sm:$0x1]  ;;  %p1244_p7 = scmp.ne.s32.totalorder %s1864_s17, %s1243_s20  ;;  %s1461_s11 = smov [#allocation8]  }
  0x93   : > { %636 = vst [vmem:[%s1697_s18] sm:$0x1] %v632_v60  ;;  %637 = vst [vmem:[%s1697_s18 + $0x1] sm:$0x1] %v633_v61  ;;  %v635_v11 = vadd.f32 %v631_v7, %v599_v62  ;;  %v503_v2 = vsel %vm455_vm0, %v497_v1, 0.0  ;;  %v556_v60 = vld [vmem:[%s1685_s23] sm:$0x1] }
  0x94   : > { %638 = vst [vmem:[%s1697_s18 + $0x2] sm:$0x1] %v634_v6  ;;  %v481_v13 = vadd.f32 %v480_v8, %v479_v9  ;;  %v502_v21 = vadd.f32 %v501_v20, %v500_v19  ;;  %v559_v19 = vld [vmem:[%s1685_s23 + $0x3] sm:$0x1]  ;;  %p1245_p10 = pnand %p1244_p7, %p2109_p3  ;;  %s1247_s7 = sshll.u32 %s1461_s11, 4  ;;  %s1248_s7 = int_to_ptr.vmem [resolvable:$false] %s1247_s7 }
  0x95   : > { %639 = vst [vmem:[%s1697_s18 + $0x3] sm:$0x1] %v635_v11  ;;  %v558_v11 = vld [vmem:[%s1685_s23 + $0x2] sm:$0x1]  ;;  %s1249_s28 = scalar_lea.vmem %s1248_s7, 128  ;;  %p1250_p9 = scmp.lt.s32.totalorder %s1864_s17, %s1248_s7 }
  0x96   : > { %1151 = vrcp.f32 %v481_v13  ;;  %v504_v29 = vadd.f32 %v503_v2, %v502_v21  ;;  %p1246_p12 = pneg %p1245_p10  ;;  %p1251_p1 = scmp.lt.s32.totalorder %s1249_s28, %s1243_s20 }
  0x97   : > { %1153 = vlog2.f32 %v481_v13 }
  0x98   : > { %p1252_p6 = por %p1251_p1, %p1250_p9 }
  0x9a   : > { %p1253_p2 = pnand %p1252_p6, %p1246_p12 }
  0xa0   : > { %v1152_v22 = vpop.eup %1151 }
  0xa1   : > { %v1154_v23 = vpop.eup %1153  ;;  %v483_v24 = vmul.f32 %v1152_v22, %v1144_v50  ;;  %v484_v25 = vmul.f32 %v1152_v22, %v1146_v54  ;;  %v485_v26 = vmul.f32 %v1152_v22, %v1148_v58  ;;  %v1817_v27 = vmul.f32 %v1152_v22, %v1150_v63 }
  0xa2   : > { %v492_v28 = vmul.f32 0.6931472, %v1154_v23  ;;  %v506_v23 = vld [vmem:[%s1682_s22] sm:$0x1] }
  0xa3   : > { %v560_v3 = vsel %vm455_vm0, %v483_v24, 0.0  ;;  %v567_v30 = vsel %vm455_vm0, %v484_v25, 0.0  ;;  %v574_v31 = vsel %vm455_vm0, %v485_v26, 0.0  ;;  %v581_v4 = vsel %vm455_vm0, %v1817_v27, 0.0 }
  0xa4   : > { %v493_v32 = vadd.f32 %v492_v28, %v1730_v12  ;;  %v561_v33 = vrot.slane %v560_v3, 4  ;;  %v568_v34 = vrot.slane %v567_v30, 4  ;;  %v575_v35 = vrot.slane %v574_v31, 4 }
  0xa5   : > { %v582_v36 = vrot.slane %v581_v4, 4  ;;  %v487_v37 = vsel %vm451_vm1, %v483_v24, 0.0  ;;  %v488_v38 = vsel %vm452_vm2, %v484_v25, 0.0  ;;  %v489_v39 = vsel %vm453_vm3, %v485_v26, 0.0 }
  0xa6   : > { %v505_v40 = vsub.f32 %v493_v32, %v504_v29  ;;  %v562_v41 = vadd.f32 %v561_v33, %v560_v3  ;;  %v569_v42 = vadd.f32 %v568_v34, %v567_v30  ;;  %v576_v43 = vadd.f32 %v575_v35, %v574_v31  ;;  %v516_v30 = vld [vmem:[%s1691_s13] sm:$0x1]  ;;  %v517_v32 = vld [vmem:[%s1691_s13 + $0x1] sm:$0x1] }
  0xa7   : > { %v583_v44 = vadd.f32 %v582_v36, %v581_v4  ;;  %v520_v12 = vsel %vm455_vm0, %v487_v37, 0.0  ;;  %v527_v45 = vsel %vm455_vm0, %v488_v38, 0.0  ;;  %v534_v46 = vsel %vm455_vm0, %v489_v39, 0.0  ;;  %v1877_v38 = vld [vmem:[%s1691_s13 + $0x2] sm:$0x1] }
  0xa8   : > { %v507_v47 = vsel %vm455_vm0, %v505_v40, 0.0  ;;  %v563_v48 = vrot.slane %v562_v41, 2  ;;  %v570_v49 = vrot.slane %v569_v42, 2  ;;  %v577_v50 = vrot.slane %v576_v43, 2 }
  0xa9   : > { %v508_v51 = vrot.slane %v507_v47, 4  ;;  %v584_v52 = vrot.slane %v583_v44, 2  ;;  %v521_v53 = vrot.slane %v520_v12, 4  ;;  %v528_v54 = vrot.slane %v527_v45, 4 }
  0xaa   : > { %v564_v55 = vadd.f32 %v563_v48, %v562_v41  ;;  %v571_v56 = vadd.f32 %v570_v49, %v569_v42  ;;  %v578_v57 = vadd.f32 %v577_v50, %v576_v43  ;;  %v535_v58 = vrot.slane %v534_v46, 4 }
  0xab   : > { %v509_v59 = vadd.f32 %v508_v51, %v507_v47  ;;  %v585_v61 = vadd.f32 %v584_v52, %v583_v44  ;;  %v522_v62 = vadd.f32 %v521_v53, %v520_v12  ;;  %v529_v63 = vadd.f32 %v528_v54, %v527_v45 }
  0xac   : > { %v565_v0 = vrot.slane %v564_v55, 1  ;;  %v572_v6 = vrot.slane %v571_v56, 1  ;;  %v579_v7 = vrot.slane %v578_v57, 1  ;;  %v536_v8 = vadd.f32 %v535_v58, %v534_v46 }
  0xad   : > { %v510_v9 = vrot.slane %v509_v59, 2  ;;  %v586_v13 = vrot.slane %v585_v61, 1  ;;  %v523_v14 = vrot.slane %v522_v62, 2  ;;  %v530_v15 = vrot.slane %v529_v63, 2 }
  0xae   : > { %v566_v16 = vadd.f32 %v565_v0, %v564_v55  ;;  %v573_v17 = vadd.f32 %v572_v6, %v571_v56  ;;  %v580_v18 = vadd.f32 %v579_v7, %v578_v57  ;;  %v537_v20 = vrot.slane %v536_v8, 2 }
  0xaf   : > { %v511_v1 = vadd.f32 %v510_v9, %v509_v59  ;;  %v587_v21 = vadd.f32 %v586_v13, %v585_v61  ;;  %v524_v2 = vadd.f32 %v523_v14, %v522_v62  ;;  %v531_v22 = vadd.f32 %v530_v15, %v529_v63 }
  0xb0   : > { %v588_v24 = vadd.f32 %v566_v16, %v556_v60  ;;  %v589_v25 = vadd.f32 %v573_v17, %v557_v5  ;;  %v590_v26 = vadd.f32 %v580_v18, %v558_v11  ;;  %v538_v28 = vadd.f32 %v537_v20, %v536_v8 }
  0xb1   : > { %v512_v29 = vrot.slane %v511_v1, 1  ;;  %v591_v3 = vadd.f32 %v587_v21, %v559_v19  ;;  %v525_v31 = vrot.slane %v524_v2, 1  ;;  %v532_v4 = vrot.slane %v531_v22, 1 }
  0xb2   : > { %592 = vst [vmem:[%s1685_s23] sm:$0x1] %v588_v24  ;;  %593 = vst [vmem:[%s1685_s23 + $0x1] sm:$0x1] %v589_v25  ;;  %v539_v33 = vrot.slane %v538_v28, 1  ;;  %v490_v34 = vsel %vm454_vm4, %v1817_v27, 0.0 }
  0xb3   : > { %594 = vst [vmem:[%s1685_s23 + $0x2] sm:$0x1] %v590_v26  ;;  %v513_v35 = vadd.f32 %v512_v29, %v511_v1  ;;  %595 = vst [vmem:[%s1685_s23 + $0x3] sm:$0x1] %v591_v3  ;;  %v526_v36 = vadd.f32 %v525_v31, %v524_v2  ;;  %v533_v37 = vadd.f32 %v532_v4, %v531_v22  ;;  %v1880_v39 = vsel %vm455_vm0, %v490_v34, 0.0  ;;  %s1893_s23 = scalar_lea.sflag [#allocation9], %s2086_s1 }
  0xb4   : > { %v540_v10 = vadd.f32 %v539_v33, %v538_v28  ;;  %v542_v27 = vrot.slane %v1880_v39, 4 }
  0xb5   : > { %1256 = shalt.err (!%p1253_p2)
}
  0xb6   : > { %s1257_s18 = scalar_lea.hbm %s1851_s9, 64  ;;  %s1261_s11 = scalar_lea.hbm %s2074_s3, 128 }
  0xb7   : > { %p1258_p5 = scmp.ne.s32.totalorder %s1851_s9, %s1257_s18  ;;  %p1262_p0 = scmp.lt.u32.totalorder %s1851_s9, %s2074_s3 }
  0xb8   : > { %p1263_p11 = scmp.lt.u32.totalorder %s1261_s11, %s1257_s18  ;;  %p1265_p7 = scmp.lt.u32.totalorder %s1257_s18, %s1851_s9 }
  0xb9   : > { %p1259_p13 = pnand %p1258_p5, %p2109_p3 }
  0xba   : > { %p1264_p4 = por %p1263_p11, %p1262_p0 }
  0xbb   : > { %p1260_p8 = pneg %p1259_p13 }
  0xbc   : > { %p1266_p10 = por %p1265_p7, %p1264_p4 }
  0xbe   : > { %p1267_p12 = pnand %p1266_p10, %p1260_p8 }
  0xc0   : > { %1270 = shalt.err (!%p1267_p12)
}
  0xc1   : > { %s1462_s28 = smov 16   ;;  %s1463_s1 = smov 1   ;;  %v514_v40 = vadd.f32 %v513_v35, %v506_v23  ;;  %v548_v41 = vadd.f32 %v526_v36, %v516_v30  ;;  %v549_v42 = vadd.f32 %v533_v37, %v517_v32 }
  0xc2   : > { %1051 = dma.vmem_to_hbm [thread:$0]  (%p2109_p3), %s1864_s17, 64, %s1851_s9, %s1893_s23, %s1462_s28, %s1462_s28, %s1463_s1  }
  0xc3   : > { %s1271_s25 = scalar_lea.vmem %s1873_s19, 64  ;;  %s1464_s20 = smov [#allocation10]  }
  0xc4   : > { %p1272_p9 = scmp.ne.s32.totalorder %s1873_s19, %s1271_s25  ;;  %s1275_s18 = sshll.u32 %s1464_s20, 4  ;;  %s1276_s18 = int_to_ptr.vmem [resolvable:$false] %s1275_s18 }
  0xc5   : > { %s1277_s27 = scalar_lea.vmem %s1276_s18, 128  ;;  %p1278_p2 = scmp.lt.s32.totalorder %s1873_s19, %s1276_s18 }
  0xc6   : > { %p1273_p1 = pnand %p1272_p9, %p2109_p3  ;;  %p1279_p5 = scmp.lt.s32.totalorder %s1277_s27, %s1271_s25 }
  0xc8   : > { %p1274_p6 = pneg %p1273_p1  ;;  %p1280_p13 = por %p1279_p5, %p1278_p2 }
  0xca   : > { %p1281_p8 = pnand %p1280_p13, %p1274_p6 }
  0xcc   : > { %1284 = shalt.err (!%p1281_p8)
}
  0xcd   : > { %s1285_s9 = scalar_lea.hbm %s1858_s12, 64  ;;  %s1289_s7 = scalar_lea.hbm %s2075_s4, 128 }
  0xce   : > { %p1286_p0 = scmp.ne.s32.totalorder %s1858_s12, %s1285_s9  ;;  %p1290_p7 = scmp.lt.u32.totalorder %s1858_s12, %s2075_s4 }
  0xcf   : > { %p1291_p10 = scmp.lt.u32.totalorder %s1289_s7, %s1285_s9  ;;  %p1293_p9 = scmp.lt.u32.totalorder %s1285_s9, %s1858_s12 }
  0xd0   : > { %p1287_p11 = pnand %p1286_p0, %p2109_p3 }
  0xd1   : > { %p1292_p12 = por %p1291_p10, %p1290_p7 }
  0xd2   : > { %p1288_p4 = pneg %p1287_p11 }
  0xd3   : > { %p1294_p1 = por %p1293_p9, %p1292_p12 }
  0xd5   : > { %p1295_p6 = pnand %p1294_p1, %p1288_p4 }
  0xd7   : > { %1298 = shalt.err (!%p1295_p6)
}
  0xd8   : > { %1052 = dma.vmem_to_hbm [thread:$0]  (%p2109_p3), %s1873_s19, 64, %s1858_s12, %s1893_s23, %s1462_s28, %s1462_s28, %s1463_s1   ;;  %v550_v43 = vadd.f32 %v540_v10, %v1877_v38  ;;  %v543_v44 = vadd.f32 %v542_v27, %v1880_v39 }
  0xd9   : > { %s1954_s9 = scalar_lea.hbm %s2077_s6, %s1756_s21  ;;  %515 = vst [vmem:[%s1682_s22] sm:$0x1] %v514_v40  ;;  %552 = vst [vmem:[%s1691_s13] sm:$0x1] %v548_v41  ;;  %s2111_s17 = sand.u32 1, %s1539_s30  }
  0xda   : > { %553 = vst [vmem:[%s1691_s13 + $0x1] sm:$0x1] %v549_v42  ;;  %554 = vst [vmem:[%s1691_s13 + $0x2] sm:$0x1] %v550_v43  ;;  %v544_v12 = vrot.slane %v543_v44, 2  ;;  %s1962_s11 = scalar_lea.sflag [#allocation12], %s2111_s17 }
  0xdb   : > { %s1299_s12 = scalar_lea.vmem %s1888_s15, 16  ;;  %s1465_s19 = smov [#allocation11]  }
  0xdc   : > { %p1300_p2 = scmp.ne.s32.totalorder %s1888_s15, %s1299_s12  ;;  %s1303_s23 = sshll.u32 %s1465_s19, 4  ;;  %s1304_s23 = int_to_ptr.vmem [resolvable:$false] %s1303_s23 }
  0xdd   : > { %s1305_s7 = scalar_lea.vmem %s1304_s23, 32  ;;  %p1306_p8 = scmp.lt.s32.totalorder %s1888_s15, %s1304_s23 }
  0xde   : > { %p1301_p5 = pnand %p1300_p2, %p2109_p3  ;;  %p1307_p0 = scmp.lt.s32.totalorder %s1305_s7, %s1299_s12 }
  0xe0   : > { %p1302_p13 = pneg %p1301_p5  ;;  %p1308_p11 = por %p1307_p0, %p1306_p8 }
  0xe2   : > { %p1309_p4 = pnand %p1308_p11, %p1302_p13 }
  0xe4   : > { %1312 = shalt.err (!%p1309_p4)
}
  0xe5   : > { %s1313_s30 = scalar_lea.hbm %s1886_s26, 16  ;;  %s1317_s20 = scalar_lea.hbm %s2076_s5, 32 }
  0xe6   : > { %p1314_p7 = scmp.ne.s32.totalorder %s1886_s26, %s1313_s30  ;;  %p1318_p9 = scmp.lt.u32.totalorder %s1886_s26, %s2076_s5 }
  0xe7   : > { %p1319_p1 = scmp.lt.u32.totalorder %s1317_s20, %s1313_s30  ;;  %p1321_p2 = scmp.lt.u32.totalorder %s1313_s30, %s1886_s26 }
  0xe8   : > { %p1315_p10 = pnand %p1314_p7, %p2109_p3 }
  0xe9   : > { %p1320_p6 = por %p1319_p1, %p1318_p9 }
  0xea   : > { %p1316_p12 = pneg %p1315_p10 }
  0xeb   : > { %p1322_p5 = por %p1321_p2, %p1320_p6 }
  0xed   : > { %p1323_p13 = pnand %p1322_p5, %p1316_p12 }
  0xef   : > { %1326 = shalt.err (!%p1323_p13)
}
  0xf0   : > { %1053 = dma.vmem_to_hbm [thread:$0]  (%p2109_p3), %s1888_s15, 16, %s1886_s26, %s1962_s11  }
  0xf1   : > { %s1327_s27 = scalar_lea.vmem %s1946_s8, 16  ;;  %s1466_s17 = smov [#allocation13]  }
  0xf2   : > { %p1328_p8 = scmp.ne.s32.totalorder %s1946_s8, %s1327_s27  ;;  %s1331_s12 = sshll.u32 %s1466_s17, 4  ;;  %s1332_s12 = int_to_ptr.vmem [resolvable:$false] %s1331_s12 }
  0xf3   : > { %s1333_s19 = scalar_lea.vmem %s1332_s12, 32  ;;  %p1334_p4 = scmp.lt.s32.totalorder %s1946_s8, %s1332_s12 }
  0xf4   : > { %p1329_p0 = pnand %p1328_p8, %p2109_p3  ;;  %p1335_p7 = scmp.lt.s32.totalorder %s1333_s19, %s1327_s27 }
  0xf6   : > { %p1330_p11 = pneg %p1329_p0  ;;  %p1336_p10 = por %p1335_p7, %p1334_p4 }
  0xf8   : > { %p1337_p12 = pnand %p1336_p10, %p1330_p11 }
  0xfa   : > { %1340 = shalt.err (!%p1337_p12)
}
  0xfb   : > { %s1341_s15 = scalar_lea.hbm %s1954_s9, 16  ;;  %s1345_s7 = scalar_lea.hbm %s2077_s6, 32 }
  0xfc   : > { %p1342_p9 = scmp.ne.s32.totalorder %s1954_s9, %s1341_s15  ;;  %p1346_p2 = scmp.lt.u32.totalorder %s1954_s9, %s2077_s6 }
  0xfd   : > { %p1347_p5 = scmp.lt.u32.totalorder %s1345_s7, %s1341_s15  ;;  %p1349_p8 = scmp.lt.u32.totalorder %s1341_s15, %s1954_s9 }
  0xfe   : > { %p1343_p1 = pnand %p1342_p9, %p2109_p3 }
  0xff   : > { %p1348_p13 = por %p1347_p5, %p1346_p2 }
 0x100   : > { %p1344_p6 = pneg %p1343_p1 }
 0x101   : > { %p1350_p0 = por %p1349_p8, %p1348_p13 }
 0x103   : > { %p1351_p11 = pnand %p1350_p0, %p1344_p6 }
 0x105   : > { %1354 = shalt.err (!%p1351_p11)
}
 0x106   : > { %1054 = dma.vmem_to_hbm [thread:$0]  (%p2109_p3), %s1946_s8, 16, %s1954_s9, %s1962_s11   ;;  %v545_v45 = vadd.f32 %v544_v12, %v543_v44  ;;  %v519_v47 = vld [vmem:[%s1691_s13 + $0x3] sm:$0x1] }
 0x107   : > { %s677_s21 = sshll.u32 %s1691_s13, 4  ;;  %s2014_s25 = scalar_lea.hbm %s2073_s2, %s1842_s0  ;;  %s2016_s21 = int_to_ptr.vmem [resolvable:$true] %s677_s21 }
 0x108   : > { %v546_v46 = vrot.slane %v545_v45, 1  ;;  %s641_s27 = scalar_lea.sflag [#allocation4], %s1662_s10  ;;  %s1355_s17 = scalar_lea.vmem %s2016_s21, 64 }
 0x109   : > { %p1356_p4 = scmp.ne.s32.totalorder %s2016_s21, %s1355_s17  ;;  %s1467_s8 = smov [#allocation7]  }
 0x10a   : > { %v547_v48 = vadd.f32 %v546_v46, %v545_v45  ;;  %s1359_s9 = sshll.u32 %s1467_s8, 4  ;;  %s1360_s9 = int_to_ptr.vmem [resolvable:$false] %s1359_s9 }
 0x10b   : > { %p1357_p7 = pnand %p1356_p4, %p2109_p3  ;;  %s1361_s11 = scalar_lea.vmem %s1360_s9, 128 }
 0x10c   : > { %v551_v49 = vadd.f32 %v547_v48, %v519_v47  ;;  %p1362_p12 = scmp.lt.s32.totalorder %s2016_s21, %s1360_s9  ;;  %p1363_p9 = scmp.lt.s32.totalorder %s1361_s11, %s1355_s17 }
 0x10d   : > { %p1358_p10 = pneg %p1357_p7 }
 0x10e   : > { %555 = vst [vmem:[%s1691_s13 + $0x3] sm:$0x1] %v551_v49  ;;  %p1364_p1 = por %p1363_p9, %p1362_p12 }
 0x110   : > { %p1365_p6 = pnand %p1364_p1, %p1358_p10 }
 0x112   : > { %1368 = shalt.err (!%p1365_p6)
}
 0x113   : > { %s1369_s13 = scalar_lea.hbm %s2014_s25, 64  ;;  %s1373_s19 = scalar_lea.hbm %s2073_s2, 128 }
 0x114   : > { %p1370_p2 = scmp.ne.s32.totalorder %s2014_s25, %s1369_s13  ;;  %p1374_p8 = scmp.lt.u32.totalorder %s2014_s25, %s2073_s2 }
 0x115   : > { %p1375_p0 = scmp.lt.u32.totalorder %s1373_s19, %s1369_s13  ;;  %p1377_p4 = scmp.lt.u32.totalorder %s1369_s13, %s2014_s25 }
 0x116   : > { %p1371_p5 = pnand %p1370_p2, %p2109_p3 }
 0x117   : > { %p1376_p11 = por %p1375_p0, %p1374_p8 }
 0x118   : > { %p1372_p13 = pneg %p1371_p5 }
 0x119   : > { %p1378_p7 = por %p1377_p4, %p1376_p11 }
 0x11b   : > { %p1379_p10 = pnand %p1378_p7, %p1372_p13 }
 0x11d   : > { %1382 = shalt.err (!%p1379_p10)
}
 0x11e   : > { %1050 = dma.vmem_to_hbm [thread:$0]  (%p2109_p3), %s2016_s21, 64, %s2014_s25, %s641_s27, %s1462_s28, %s1462_s28, %s1463_s1  }
 0x11f PF: > { %s768_s23 = sand.u32 1, %s1433_s24   ;;  %p2112_p12 = scmp.ne.s32.totalorder %s2099_s16, 0 }
 0x120   : > { %p2113_p9 = scmp.ge.s32.totalorder %s1453_s29, 2  ;;  %s769_s7 = scalar_lea.sflag [#allocation4], %s768_s23 }
 0x122   : > { %p1070_p1 = pnand %p2113_p9, %p2112_p12 }
 0x124   : > { %1416 = dma.done.wait (!%p1070_p1), %s769_s7, 64  }
 0x125   : > { %1418 = vsyncadd (!%p1070_p1), %s769_s7, 4294967232  ;;  %s2114_s14 = sadd.s32 4294967294, %s1453_s29  }
 0x126   : > { %s777_s30 = sand.u32 1, %s2114_s14  }
 0x127   : > { %s778_s22 = scalar_lea.sflag [#allocation9], %s777_s30 }
 0x128   : > { %1420 = dma.done.wait (!%p1070_p1), %s778_s22, 128  }
 0x129   : > { %1422 = vsyncadd (!%p1070_p1), %s778_s22, 4294967168  ;;  %s796_s10 = scalar_lea.sflag [#allocation12], %s777_s30 }
 0x12a   : > { %1424 = dma.done.wait (!%p1070_p1), %s796_s10, 32  }
 0x12b   : > { %1426 = vsyncadd (!%p1070_p1), %s796_s10, 4294967264  ;;  %s812_s28 = scalar_lea.sflag [#allocation15], %s768_s23 }
 0x12c   : > { %1428 = dma.done.wait (!%p1070_p1), %s812_s28, 16  }
 0x12d   : > { %1430 = vsyncadd (!%p1070_p1), %s812_s28, 4294967280  ;;  %s36_s29 = sadd.s32 1, %s1453_s29   ;;  %s2115_s24 = sld [smem:[#allocation22_spill]] }
 0x12e   : > { %p33_p3 = scmp.ge.s32.totalorder %s36_s29, 4   ;;  %s2116_s25 = sld [smem:[#allocation23_spill]] }
 0x12f   : > { %s2117_s26 = sld [smem:[#allocation26_spill]]  ;;  %s2118_s27 = sld [smem:[#allocation24_spill]] }
 0x130   : > { %s2119_s28 = sld [smem:[#allocation25_spill]]  ;;  %35 = sbr.rel (!%p33_p3) target bundleno = 18 (0x12), region = 171 }
 0x137   :  { %816 = vsyncpa [#allocation3], 1 }
 0x138   :  { %818 = vsyncpa [#allocation3 + $0x1], 1 }
 0x139   :  { %819 = vsyncpa [#allocation6], 1 }
 0x13a   :  { %821 = vsyncpa [#allocation6 + $0x1], 1 }
 0x13b   :  { %822 = vsyncpa [#allocation4], 1 }
 0x13c   :  { %824 = vsyncpa [#allocation4 + $0x1], 1 }
 0x13d   :  { %825 = vsyncpa [#allocation9], 1 }
 0x13e   :  { %827 = vsyncpa [#allocation9 + $0x1], 1 }
 0x13f   :  { %828 = vsyncpa [#allocation12], 1 }
 0x140   :  { %830 = vsyncpa [#allocation12 + $0x1], 1 }
 0x141   :  { %831 = vsyncpa [#allocation15], 1 }
 0x142   :  { %833 = vsyncpa [#allocation15 + $0x1], 1 }

</bundles_post_ra>
